<compile_context>
chip_gen: v7x
topology: tpu7x:2x2x1
jax: 0.10.0
libtpu: 0.0.40
codegen_flags: <defaults>
</compile_context>

<pallas_src>
import functools

import jax
import jax.numpy as jnp
from jax.experimental import pallas as pl
from jax.experimental.pallas import tpu as pltpu


def fcnn_kernel(xT_ref, w1T_ref, b1_ref, w2T_ref, b2_ref, w3T_ref, b3_ref,
                w4T_ref, b4_ref, o_ref):
    """Whole MLP forward for one batch tile, feature-major (features x batch)."""
    xT = xT_ref[...].astype(jnp.float32)                       # (D, tile_b)

    h = jnp.tanh(
        jnp.dot(w1T_ref[...], xT, preferred_element_type=jnp.float32)
        + b1_ref[...])                                          # (20, tile_b)
    h = jnp.tanh(
        jnp.dot(w2T_ref[...], h, preferred_element_type=jnp.float32)
        + b2_ref[...])                                          # (20, tile_b)
    h = jnp.tanh(
        jnp.dot(w3T_ref[...], h, preferred_element_type=jnp.float32)
        + b3_ref[...])                                          # (20, tile_b)
    out = (jnp.dot(w4T_ref[...], h, preferred_element_type=jnp.float32)
           + b4_ref[...])                                       # (1, tile_b)

    o_ref[...] = out.astype(o_ref.dtype)


def _round_up(x, m):
    return ((x + m - 1) // m) * m


def fcnn_forward(x, params, *, tile_b=512):
    """x: (B, input_dim) float32. params: w1..w4 stored (in, out), b1..b4 (1, out).

    Returns (B, 1) float32, matching the PyTorch FCNN forward.
    """
    B, D = x.shape
    H = params["w1"].shape[1]      # 20
    O = params["w4"].shape[1]      # 1

    # Lane-dense batch tiles: multiple of 128, and small enough that we get at
    # least 2 grid steps (so v7x can use both TensorCores).
    tile_b = max(128, (tile_b // 128) * 128)
    tile_b = min(tile_b, _round_up(pl.cdiv(B, 2), 128))
    n_tiles = max(2, pl.cdiv(B, tile_b))
    B_pad = n_tiles * tile_b

    # Pad batch and go feature-major: (D, B_pad). Padded rows are zeros and are
    # simply cropped from the output.
    x_pad = jnp.zeros((B_pad, D), x.dtype).at[:B].set(x)
    xT = x_pad.T                                                # (D, B_pad)

    # Pre-transpose the tiny weights once: compute y = W^T @ x^T + b.
    w1T = params["w1"].T            # (H, D)
    w2T = params["w2"].T            # (H, H)
    w3T = params["w3"].T            # (H, H)
    w4T = params["w4"].T            # (O, H)
    b1 = params["b1"].reshape(H, 1)
    b2 = params["b2"].reshape(H, 1)
    b3 = params["b3"].reshape(H, 1)
    b4 = params["b4"].reshape(O, 1)

    grid = (n_tiles,)

    def full_spec(shape):
        # Whole (small) parameter arrays live in VMEM, same block every step.
        return pl.BlockSpec(shape, lambda i: (0,) * len(shape))

    in_specs = [
        pl.BlockSpec((D, tile_b), lambda i: (0, i)),            # x^T tile
        full_spec(w1T.shape), full_spec(b1.shape),
        full_spec(w2T.shape), full_spec(b2.shape),
        full_spec(w3T.shape), full_spec(b3.shape),
        full_spec(w4T.shape), full_spec(b4.shape),
    ]
    # Lane-dense output: (1, B_pad), one (1, tile_b) block per grid step.
    out_specs = pl.BlockSpec((O, tile_b), lambda i: (0, i))

    flops = 2 * B_pad * (D * H + H * H + H * H + H * O)
    transcendentals = 3 * H * B_pad
    bytes_accessed = 4 * (B_pad * D + B_pad * O
                          + D * H + 3 * H + 2 * H * H + H * O + O)

    out_T = pl.pallas_call(
        fcnn_kernel,
        out_shape=jax.ShapeDtypeStruct((O, B_pad), jnp.float32),
        grid_spec=pltpu.PrefetchScalarGridSpec(
            num_scalar_prefetch=0,
            grid=grid,
            in_specs=in_specs,
            out_specs=out_specs,
        ),
        compiler_params=pltpu.CompilerParams(
            dimension_semantics=("parallel",)),
        cost_estimate=pl.CostEstimate(
            flops=flops,
            transcendentals=transcendentals,
            bytes_accessed=bytes_accessed),
    )(xT, w1T, b1, w2T, b2, w3T, b3, w4T, b4)

    # Back to (B, 1), cropping the batch padding.
    return out_T[0, :B].reshape(B, O)


def xavier_uniform(key, fan_in, fan_out, dtype=jnp.float32):
    # Matches nn.init.xavier_uniform_ (gain=1): U(-a, a), a = sqrt(6/(fan_in+fan_out))
    a = jnp.sqrt(6.0 / (fan_in + fan_out))
    return jax.random.uniform(key, (fan_in, fan_out), dtype, minval=-a, maxval=a)


def init_params(key, input_dim, hidden=20, out_dim=1):
    k1, k2, k3, k4 = jax.random.split(key, 4)
    return {
        "w1": xavier_uniform(k1, input_dim, hidden),
        "b1": jnp.zeros((1, hidden), jnp.float32),
        "w2": xavier_uniform(k2, hidden, hidden),
        "b2": jnp.zeros((1, hidden), jnp.float32),
        "w3": xavier_uniform(k3, hidden, hidden),
        "b3": jnp.zeros((1, hidden), jnp.float32),
        "w4": xavier_uniform(k4, hidden, out_dim),
        "b4": jnp.zeros((1, out_dim), jnp.float32),
    }


def fcnn_reference(x, p):
    h = jnp.tanh(x @ p["w1"] + p["b1"])
    h = jnp.tanh(h @ p["w2"] + p["b2"])
    h = jnp.tanh(h @ p["w3"] + p["b3"])
    return h @ p["w4"] + p["b4"]


if __name__ == "__main__":
    key = jax.random.PRNGKey(0)
    k_x, k_p = jax.random.split(key)

    batch, input_dim = 8, 4
    x = jax.random.normal(k_x, (batch, input_dim), jnp.float32)
    params = init_params(k_p, input_dim)

    out = fcnn_forward(x, params, tile_b=512)
    out = jax.block_until_ready(out)

    ref = fcnn_reference(x, params)
    assert out.shape == (batch, 1)
    assert jnp.allclose(out, ref, atol=1e-5, rtol=1e-5), "mismatch vs reference"

    # Also exercise a larger, non-multiple batch to cover the padding path.
    k_x2, _ = jax.random.split(k_x)
    x_big = jax.random.normal(k_x2, (1000, input_dim), jnp.float32)
    out_big = jax.block_until_ready(fcnn_forward(x_big, params, tile_b=512))
    assert out_big.shape == (1000, 1)
    assert jnp.allclose(out_big, fcnn_reference(x_big, params),
                        atol=1e-5, rtol=1e-5), "mismatch vs reference (big batch)"

    print("KERNEL_OK")
</pallas_src>

<mosaic_0001>
module attributes {stable_mosaic.version = 11 : i64} {
  func.func @fcnn_kernel(%arg0: i32, %arg1: memref<4x128xf32, #tpu.memory_space<vmem>>, %arg2: memref<20x4xf32, #tpu.memory_space<vmem>>, %arg3: memref<20x1xf32, #tpu.memory_space<vmem>>, %arg4: memref<20x20xf32, #tpu.memory_space<vmem>>, %arg5: memref<20x1xf32, #tpu.memory_space<vmem>>, %arg6: memref<20x20xf32, #tpu.memory_space<vmem>>, %arg7: memref<20x1xf32, #tpu.memory_space<vmem>>, %arg8: memref<1x20xf32, #tpu.memory_space<vmem>>, %arg9: memref<1x1xf32, #tpu.memory_space<vmem>>, %arg10: memref<1x128xf32, #tpu.memory_space<vmem>>) attributes {dimension_semantics = [#tpu.dimension_semantics<parallel>], iteration_bounds = array<i64: 2>, scalar_prefetch = 0 : i64, scratch_operands = 0 : i64, tpu.core_type = #tpu.core_type<tc>, window_params = [{transform_indices = @transform_0, window_bounds = array<i64: 4, 128>}, {pipeline_mode = #tpu.pipeline_mode<synchronous>, transform_indices = @transform_1, window_bounds = array<i64: 20, 4>}, {pipeline_mode = #tpu.pipeline_mode<synchronous>, transform_indices = @transform_2, window_bounds = array<i64: 20, 1>}, {pipeline_mode = #tpu.pipeline_mode<synchronous>, transform_indices = @transform_3, window_bounds = array<i64: 20, 20>}, {pipeline_mode = #tpu.pipeline_mode<synchronous>, transform_indices = @transform_4, window_bounds = array<i64: 20, 1>}, {pipeline_mode = #tpu.pipeline_mode<synchronous>, transform_indices = @transform_5, window_bounds = array<i64: 20, 20>}, {pipeline_mode = #tpu.pipeline_mode<synchronous>, transform_indices = @transform_6, window_bounds = array<i64: 20, 1>}, {pipeline_mode = #tpu.pipeline_mode<synchronous>, transform_indices = @transform_7, window_bounds = array<i64: 1, 20>}, {pipeline_mode = #tpu.pipeline_mode<synchronous>, transform_indices = @transform_8, window_bounds = array<i64: 1, 1>}, {transform_indices = @transform_9, window_bounds = array<i64: 1, 128>}]} {
    %c0 = arith.constant 0 : index
    %c0_0 = arith.constant 0 : index
    %0 = vector.load %arg1[%c0, %c0_0] : memref<4x128xf32, #tpu.memory_space<vmem>>, vector<4x128xf32>
    %c0_1 = arith.constant 0 : index
    %c0_2 = arith.constant 0 : index
    %1 = vector.load %arg2[%c0_1, %c0_2] : memref<20x4xf32, #tpu.memory_space<vmem>>, vector<20x4xf32>
    %cst = arith.constant dense<0.000000e+00> : vector<20x128xf32>
    %2 = tpu.matmul %1, %0, %cst {dimension_numbers = #tpu.dot_dimension_numbers<[1], [0], [0], [1], [0, 0, 1, 1], [], []>} : vector<20x4xf32>, vector<4x128xf32>, vector<20x128xf32> -> vector<20x128xf32>
    %c0_3 = arith.constant 0 : index
    %c0_4 = arith.constant 0 : index
    %3 = vector.load %arg3[%c0_3, %c0_4] : memref<20x1xf32, #tpu.memory_space<vmem>>, vector<20x1xf32>
    %4 = vector.broadcast %3 : vector<20x1xf32> to vector<20x128xf32>
    %5 = arith.addf %2, %4 : vector<20x128xf32>
    %6 = math.tanh %5 : vector<20x128xf32>
    %c0_5 = arith.constant 0 : index
    %c0_6 = arith.constant 0 : index
    %7 = vector.load %arg4[%c0_5, %c0_6] : memref<20x20xf32, #tpu.memory_space<vmem>>, vector<20x20xf32>
    %cst_7 = arith.constant dense<0.000000e+00> : vector<20x128xf32>
    %8 = tpu.matmul %7, %6, %cst_7 {dimension_numbers = #tpu.dot_dimension_numbers<[1], [0], [0], [1], [0, 0, 1, 1], [], []>} : vector<20x20xf32>, vector<20x128xf32>, vector<20x128xf32> -> vector<20x128xf32>
    %c0_8 = arith.constant 0 : index
    %c0_9 = arith.constant 0 : index
    %9 = vector.load %arg5[%c0_8, %c0_9] : memref<20x1xf32, #tpu.memory_space<vmem>>, vector<20x1xf32>
    %10 = vector.broadcast %9 : vector<20x1xf32> to vector<20x128xf32>
    %11 = arith.addf %8, %10 : vector<20x128xf32>
    %12 = math.tanh %11 : vector<20x128xf32>
    %c0_10 = arith.constant 0 : index
    %c0_11 = arith.constant 0 : index
    %13 = vector.load %arg6[%c0_10, %c0_11] : memref<20x20xf32, #tpu.memory_space<vmem>>, vector<20x20xf32>
    %cst_12 = arith.constant dense<0.000000e+00> : vector<20x128xf32>
    %14 = tpu.matmul %13, %12, %cst_12 {dimension_numbers = #tpu.dot_dimension_numbers<[1], [0], [0], [1], [0, 0, 1, 1], [], []>} : vector<20x20xf32>, vector<20x128xf32>, vector<20x128xf32> -> vector<20x128xf32>
    %c0_13 = arith.constant 0 : index
    %c0_14 = arith.constant 0 : index
    %15 = vector.load %arg7[%c0_13, %c0_14] : memref<20x1xf32, #tpu.memory_space<vmem>>, vector<20x1xf32>
    %16 = vector.broadcast %15 : vector<20x1xf32> to vector<20x128xf32>
    %17 = arith.addf %14, %16 : vector<20x128xf32>
    %18 = math.tanh %17 : vector<20x128xf32>
    %c0_15 = arith.constant 0 : index
    %c0_16 = arith.constant 0 : index
    %19 = vector.load %arg8[%c0_15, %c0_16] : memref<1x20xf32, #tpu.memory_space<vmem>>, vector<1x20xf32>
    %cst_17 = arith.constant dense<0.000000e+00> : vector<1x128xf32>
    %20 = tpu.matmul %19, %18, %cst_17 {dimension_numbers = #tpu.dot_dimension_numbers<[1], [0], [0], [1], [0, 0, 1, 1], [], []>} : vector<1x20xf32>, vector<20x128xf32>, vector<1x128xf32> -> vector<1x128xf32>
    %c0_18 = arith.constant 0 : index
    %c0_19 = arith.constant 0 : index
    %21 = vector.load %arg9[%c0_18, %c0_19] : memref<1x1xf32, #tpu.memory_space<vmem>>, vector<1x1xf32>
    %22 = vector.broadcast %21 : vector<1x1xf32> to vector<1x128xf32>
    %23 = arith.addf %20, %22 : vector<1x128xf32>
    %c0_20 = arith.constant 0 : index
    %c0_21 = arith.constant 0 : index
    %24 = vector.load %arg10[%c0_20, %c0_21] : memref<1x128xf32, #tpu.memory_space<vmem>>, vector<1x128xf32>
    tpu.vector_store %arg10[%c0_20, %c0_21], %23 {strides = array<i32>} : memref<1x128xf32, #tpu.memory_space<vmem>>, vector<1x128xf32>,
    return
  }
  func.func @transform_0(%arg0: i32) -> (i32, i32) {
    %c0_i32 = arith.constant 0 : i32
    %c0_i32_0 = arith.constant 0 : i32
    return %c0_i32, %arg0 : i32, i32
  }
  func.func @transform_1(%arg0: i32) -> (i32, i32) {
    %c0_i32 = arith.constant 0 : i32
    %c0_i32_0 = arith.constant 0 : i32
    %c0_i32_1 = arith.constant 0 : i32
    return %c0_i32, %c0_i32_0 : i32, i32
  }
  func.func @transform_2(%arg0: i32) -> (i32, i32) {
    %c0_i32 = arith.constant 0 : i32
    %c0_i32_0 = arith.constant 0 : i32
    %c0_i32_1 = arith.constant 0 : i32
    return %c0_i32, %c0_i32_0 : i32, i32
  }
  func.func @transform_3(%arg0: i32) -> (i32, i32) {
    %c0_i32 = arith.constant 0 : i32
    %c0_i32_0 = arith.constant 0 : i32
    %c0_i32_1 = arith.constant 0 : i32
    return %c0_i32, %c0_i32_0 : i32, i32
  }
  func.func @transform_4(%arg0: i32) -> (i32, i32) {
    %c0_i32 = arith.constant 0 : i32
    %c0_i32_0 = arith.constant 0 : i32
    %c0_i32_1 = arith.constant 0 : i32
    return %c0_i32, %c0_i32_0 : i32, i32
  }
  func.func @transform_5(%arg0: i32) -> (i32, i32) {
    %c0_i32 = arith.constant 0 : i32
    %c0_i32_0 = arith.constant 0 : i32
    %c0_i32_1 = arith.constant 0 : i32
    return %c0_i32, %c0_i32_0 : i32, i32
  }
  func.func @transform_6(%arg0: i32) -> (i32, i32) {
    %c0_i32 = arith.constant 0 : i32
    %c0_i32_0 = arith.constant 0 : i32
    %c0_i32_1 = arith.constant 0 : i32
    return %c0_i32, %c0_i32_0 : i32, i32
  }
  func.func @transform_7(%arg0: i32) -> (i32, i32) {
    %c0_i32 = arith.constant 0 : i32
    %c0_i32_0 = arith.constant 0 : i32
    %c0_i32_1 = arith.constant 0 : i32
    return %c0_i32, %c0_i32_0 : i32, i32
  }
  func.func @transform_8(%arg0: i32) -> (i32, i32) {
    %c0_i32 = arith.constant 0 : i32
    %c0_i32_0 = arith.constant 0 : i32
    %c0_i32_1 = arith.constant 0 : i32
    return %c0_i32, %c0_i32_0 : i32, i32
  }
  func.func @transform_9(%arg0: i32) -> (i32, i32) {
    %c0_i32 = arith.constant 0 : i32
    %c0_i32_0 = arith.constant 0 : i32
    return %c0_i32, %arg0 : i32, i32
  }
}

</mosaic_0001>

<bundles_post_ra>
// kernel: tpu_custom_call.1
= control target key start
LH: loop header
LB: loop body
LE: loop exit
PB: predicated region body
PF: predicated region fallthrough
CT: control target
= control target key end

     0   :  { %s1322_s0 = inlined_call_operand.vmem [shape: f32[4,256], index: 0, kind: input, shape index: {}]   ;;  %s1323_s1 = inlined_call_operand.vmem [shape: f32[20,4], index: 1, kind: input, shape index: {}]   ;;  %s1324_s2 = inlined_call_operand.vmem [shape: f32[20,1], index: 2, kind: input, shape index: {}]   ;;  %s1325_s3 = inlined_call_operand.vmem [shape: f32[20,20], index: 3, kind: input, shape index: {}]   ;;  %s1326_s4 = inlined_call_operand.vmem [shape: f32[20,1], index: 4, kind: input, shape index: {}]   ;;  %s1327_s5 = inlined_call_operand.vmem [shape: f32[20,20], index: 5, kind: input, shape index: {}]   ;;  %s1328_s6 = inlined_call_operand.vmem [shape: f32[20,1], index: 6, kind: input, shape index: {}]   ;;  %s1329_s7 = inlined_call_operand.vmem [shape: f32[1,20], index: 7, kind: input, shape index: {}]   ;;  %s1330_s8 = inlined_call_operand.<no memory space> [shape: f32[1,1], index: 8, kind: input, shape index: {}]   ;;  %s1331_s9 = inlined_call_operand.hbm [shape: f32[1,256], index: 9, kind: output, shape index: {}]  }
   0x1   :  { %v14_v0 = vstv %s1330_s8 }
   0x2   :  { %15 = vst [vmem:[#allocation2] sm:$0x1] %v14_v0 }
   0x3   :  { %16 = vsyncpa [#allocation4], 0 }
   0x4   :  { %18 = vsyncpa [#allocation4 + $0x1], 0  ;;  %s1125_s11 = smov 0   ;;  %s1127_s12 = smov 0  }
   0x5   :  { %s1129_s13 = smov 0   ;;  %s1131_s14 = smov 0  }
   0x6 LB: > { %s1146_s8 = sadd.s32 4294967295, %s1065_s14   ;;  %s837_s15 = sadd.s32 4294967294, %s1065_s14   ;;  %s1065_s14 = sphi %s1131_s14, %s1337_s14   ;;  %s1061_s13 = sphi %s1129_s13, %s1336_s13   ;;  %s1057_s12 = sphi %s1127_s12, %s1335_s12   ;;  %s1053_s11 = sphi %s1125_s11, %s1334_s11  }
   0x7   : > { %s1150_s16 = sadd.s32 1, %s1065_s14   ;;  %s225_s17 = sadd.s32 1, %s1061_s13 }
   0x8   : > { %s222_s18 = ssub.s32 %s1065_s14, %s1150_s16  ;;  %p235_p0 = scmp.ne.s32.totalorder %s1061_s13, %s1057_s12 }
   0x9   : > { %p223_p1 = scmp.eq.s32.totalorder %s222_s18, 0  ;;  %p236_p2 = scmp.eq.s32.totalorder %s1146_s8, 1 }
   0xa   : > { %p241_p3 = scmp.ne.s32.totalorder %s1057_s12, %s1053_s11  ;;  %p242_p4 = scmp.eq.s32.totalorder %s837_s15, 1 }
   0xb   : > { %s1161_s19 = scalar_select %p223_p1, %s1061_s13, %s225_s17  }
   0xc   : > { %p1163_p5 = por %p236_p2, %p235_p0  ;;  %p1167_p6 = por %p242_p4, %p241_p3 }
   0xd   : > { %p840_p7 = scmp.ge.s32.totalorder %s1065_s14, 1  ;;  %p291_p8 = scmp.lt.s32.totalorder %s1065_s14, 3 }
   0xf   : > { %p292_p9 = pnand %p840_p7, %p291_p8 }
  0x10   : > { %p325_p10 = scmp.lt.s32.totalorder (!%p292_p9), %s1146_s8, 1  ;;  %v1067_v1 = vmov (!%p292_p9), 0.0   ;;  %vm1068_vm0 = vmmov (!%p292_p9), 0   ;;  %v333_v2 = vld [vmem:[%s1324_s2] sm:$0xff] (!%p292_p9)  ;;  %v335_v3 = vld [vmem:[%s1324_s2 + $0x10] sm:$0xf] (!%p292_p9) }
  0x11   : > { %295 = sbr.rel (%p292_p9) target bundleno = 966 (0x3c6), region = 56  ;;  %879 = vmatprep.subr.mxu0 (!%p292_p9), %v1067_v1  ;;  %881 = vmatprep.mubr.msk.f32.mxu0 (!%p292_p9), %vm1068_vm0, %v1067_v1  ;;  %v1069_v4 = vmov (!%p292_p9), 0   ;;  %vm361_vm1 = vcmask (!%p292_p9), 1043456   ;;  %v330_v5 = vld [vmem:[%s1323_s1] sm:$0xff] (!%p292_p9)  ;;  %vm351_vm2 = vcmask (!%p292_p9), 31744   ;;  %v334_v8 = vld [vmem:[%s1324_s2 + $0x8] sm:$0xff] (!%p292_p9) }
  0x12   : > { %938 = vmatprep.subr.mxu1 (!%p292_p9), %v1067_v1  ;;  %887 = vmatprep.mubr.msk.f32.mxu1 (!%p292_p9), %vm1068_vm0, %v1067_v1  ;;  %v332_v6 = vld [vmem:[%s1323_s1 + $0x10] sm:$0xf] (!%p292_p9)  ;;  %v451_v9 = vld [vmem:[%s1326_s4] sm:$0xff] (!%p292_p9)  ;;  %v331_v10 = vld [vmem:[%s1323_s1 + $0x8] sm:$0xff] (!%p292_p9)  ;;  %v1070_v17 = vmov (!%p292_p9), 0.0|0.0   ;;  %vm469_vm3 = vcmask (!%p292_p9), 162816  }
  0x13   : > { %983 = vset.pattern.permute.xlu0 (!%p292_p9), %v1069_v4  ;;  %984 = vset.pattern.permute.xlu1 (!%p292_p9), %v1069_v4  ;;  %v452_v11 = vld [vmem:[%s1326_s4 + $0x8] sm:$0xff] (!%p292_p9)  ;;  %v453_v12 = vld [vmem:[%s1326_s4 + $0x10] sm:$0xf] (!%p292_p9)  ;;  %v568_v13 = vld [vmem:[%s1328_s6] sm:$0xff] (!%p292_p9)  ;;  %s323_s26 = sand.u32 (!%p292_p9), 1, %s1057_s12  }
  0x14   : > { %338 = vperm.xlu0 (!%p292_p9), %983, %v333_v2   ;;  %348 = vperm.xlu1 (!%p292_p9), %984, %v335_v3   ;;  %v569_v14 = vld [vmem:[%s1328_s6 + $0x8] sm:$0xff] (!%p292_p9)  ;;  %v570_v15 = vld [vmem:[%s1328_s6 + $0x10] sm:$0xf] (!%p292_p9)  ;;  %v682_v16 = vld [vmem:[#allocation2] sm:$0x1] (!%p292_p9)  ;;  %s324_s28 = scalar_lea.vmem (!%p292_p9), [#allocation3], %s323_s26 }
  0x15   : > { %v448_v34 = vld [vmem:[%s1325_s3] sm:$0xff] (!%p292_p9)  ;;  %v449_v35 = vld [vmem:[%s1325_s3 + $0x8] sm:$0xff] (!%p292_p9)  ;;  %v450_v36 = vld [vmem:[%s1325_s3 + $0x10] sm:$0xf] (!%p292_p9)  ;;  %s782_s29 = sshll.u32 (!%p292_p9), %s324_s28, 4  ;;  %s770_s17 = scalar_lea.sflag (!%p292_p9), [#allocation4], %s323_s26  ;;  %s1282_s29 = int_to_ptr.vmem [resolvable:$true] %s782_s29 }
  0x16   : > { %v565_v52 = vld [vmem:[%s1327_s5] sm:$0xff] (!%p292_p9)  ;;  %v566_v54 = vld [vmem:[%s1327_s5 + $0x8] sm:$0xff] (!%p292_p9)  ;;  %v567_v55 = vld [vmem:[%s1327_s5 + $0x10] sm:$0xf] (!%p292_p9)  ;;  %s1003_s18 = scalar_lea.vmem (!%p292_p9), %s1282_s29, 16 }
  0x17   : > { %p1004_p11 = scmp.ne.s32.totalorder (!%p292_p9), %s1282_s29, %s1003_s18 }
  0x18   : > { %s326_s24 = scalar_select %p325_p10, %s1146_s8, 1  ;;  %343 = vperm.xlu0 %983, %v334_v8   ;;  %456 = vperm.xlu1 %984, %v451_v9   ;;  %v681_v8 = vld [vmem:[%s1329_s7] sm:$0x1] }
  0x19   : > { %p1005_p12 = pnand %p1004_p11, %p1163_p5 }
  0x1a   : > { %s841_s27 = sshll.u32 %s326_s24, 2 }
  0x1b   : > { %s328_s30 = scalar_lea.vmem %s1322_s0, %s841_s27  ;;  %s856_s27 = sshll.u32 %s1146_s8, 4 }
  0x1c   : > { %v329_v7 = vld [vmem:[%s328_s30] sm:$0xf]  ;;  %461 = vperm.xlu0 %983, %v452_v11   ;;  %466 = vperm.xlu1 %984, %v453_v12   ;;  %s1280_s15 = scalar_lea.hbm %s1331_s9, %s856_s27  ;;  %p1006_p13 = pneg %p1005_p12 }
  0x1d   : > { %880 = vmatpush3.msk.msra.mxu0 %vm361_vm1, %v329_v7  ;;  %939 = vmatpush3.msk.msra.mxu1 %vm361_vm1, %v329_v7  ;;  %s1071_s8 = smov [#allocation3]  }
  0x1e   : > { %882 = vmatmul.mubr.msk.f32.vlgmr.msra.gmra.mrb[0].mxu0 %vm351_vm2, %v330_v5  ;;  %888 = vmatmul.mubr.msk.f32.vlgmr.msra.gmra.mrb[0].mxu1 %vm351_vm2, %v332_v6  ;;  %s1007_s22 = sshll.u32 %s1071_s8, 4  ;;  %s1008_s22 = int_to_ptr.vmem [resolvable:$false] %s1007_s22 }
  0x1f   : > { %884 = vmatprep.mubr.msk.f32.mxu0 %vm1068_vm0, %v1067_v1  ;;  %896 = vmatprep.mubr.msk.f32.mxu1 %vm1068_vm0, %v1067_v1  ;;  %s1009_s23 = scalar_lea.vmem %s1008_s22, 32  ;;  %p1010_p0 = scmp.lt.s32.totalorder %s1282_s29, %s1008_s22 }
  0x20   : > { %573 = vperm.xlu0 %983, %v568_v13   ;;  %578 = vperm.xlu1 %984, %v569_v14   ;;  %p1011_p1 = scmp.lt.s32.totalorder %s1009_s23, %s1003_s18 }
  0x21   : > { %929 = vmatprep.subr.bf16.mxu1 %v1070_v17  ;;  %932 = vmatprep.subr.bf16.mxu0 %v1070_v17 }
  0x22   : > { %885 = vmatmul.mubr.msk.f32.gmra.mrb[2].mxu0 %vm351_vm2, %v331_v10  ;;  %v688_v10 = vlaneseq  ;;  %p1012_p2 = por %p1011_p1, %p1010_p0 }
  0x23   : > { %911 = vmatprep.mubr.msk.f32.mxu0 %vm1068_vm0, %v1067_v1 }
  0x24   : > { %583 = vperm.xlu0 %983, %v570_v15   ;;  %685 = vperm.xlu1 %984, %v682_v16   ;;  %v689_v11 = vshrl.u32 %v688_v10, 7  ;;  %p1013_p3 = pnand %p1012_p2, %p1006_p13 }
  0x26   : > { %v690_v12 = vsub.s32 0, %v689_v11 }
  0x93   : > { %v339_v18 = vpop.permute.xlu0 %338  ;;  %v349_v28 = vpop.permute.xlu1 %348 }
  0x97   : > { %v344_v24 = vpop.permute.xlu0 %343  ;;  %v457_v38 = vpop.permute.xlu1 %456 }
  0x9b   : > { %v462_v41 = vpop.permute.xlu0 %461  ;;  %v467_v45 = vpop.permute.xlu1 %466 }
  0x9f   : > { %v574_v57 = vpop.permute.xlu0 %573  ;;  %v579_v60 = vpop.permute.xlu1 %578 }
  0xa3   : > { %v584_v0 = vpop.permute.xlu0 %583  ;;  %v686_v13 = vpop.permute.xlu1 %685 }
  0xa4   : > { %v691_v14 = vrot.slane %v686_v13, %v690_v12 }
  0xf1   : > { %v431_v19 = vpop.f32.mrb[0].mxu0  ;;  %v441_v20 = vpop.f32.mrb[0].mxu1 }
  0xf2   : > { %v883_v21 = vpop.f32.mrb[1].mxu0  ;;  %v889_v22 = vpop.f32.mrb[1].mxu1  ;;  %v432_v23 = vadd.f32 %v431_v19, %v339_v18  ;;  %v442_v29 = vadd.f32 %v441_v20, %v349_v28 }
  0xf4   : > { %985 = vtanh.f32 %v432_v23 }
  0xf5   : > { %v436_v25 = vpop.f32.mrb[2].mxu0 }
  0xf6   : > { %v437_v26 = vadd.f32 %v436_v25, %v344_v24  ;;  %v886_v27 = vpop.f32.mrb[3].mxu0 }
  0xf8   : > { %987 = vtanh.f32 %v437_v26 }
  0xf9   : > { %989 = vtanh.f32 %v442_v29 }
  0xfe   : > { %v986_v30 = vpop.eup %985 }
 0x102   : > { %v988_v31 = vpop.eup %987 }
 0x103   : > { %v930_v32 = vpack.c.bf16 %v988_v31, %v986_v30  ;;  %v990_v33 = vpop.eup %989 }
 0x105   : > { %931 = vmatpush3.bf16.msra.mxu1 %v930_v32 }
 0x106   : > { %894 = vmatprep.subr.mxu1 %v1067_v1 }
 0x109   : > { %895 = vmatpush3.msk.msra.mxu1 %vm361_vm1, %v990_v33 }
 0x10a   : > { %897 = vmatmul.mubr.msk.f32.vlgmr.msra.gmra.mrb[2].mxu1 %vm469_vm3, %v448_v34  ;;  %935 = vmatprep.subr.bf16.mxu1 %v1070_v17 }
 0x10b   : > { %899 = vmatprep.mubr.msk.f32.mxu1 %vm1068_vm0, %v1067_v1 }
 0x10e   : > { %900 = vmatmul.mubr.msk.f32.gmra.mrb[4].mxu1 %vm469_vm3, %v449_v35 }
 0x10f   : > { %902 = vmatprep.mubr.msk.f32.mxu1 %vm1068_vm0, %v1067_v1 }
 0x112   : > { %903 = vmatmul.mubr.msk.f32.gmra.mrb[6].mxu1 %vm469_vm3, %v450_v36 }
 0x113   : > { %926 = vmatprep.mubr.msk.f32.mxu1 %vm1068_vm0, %v1067_v1 }
 0x1dd   : > { %v548_v37 = vpop.f32.mrb[2].mxu1 }
 0x1de   : > { %v898_v39 = vpop.f32.mrb[3].mxu1  ;;  %v549_v40 = vadd.f32 %v548_v37, %v457_v38 }
 0x1e0   : > { %991 = vtanh.f32 %v549_v40 }
 0x1e1   : > { %v553_v42 = vpop.f32.mrb[4].mxu1 }
 0x1e2   : > { %v554_v43 = vadd.f32 %v553_v42, %v462_v41  ;;  %v901_v44 = vpop.f32.mrb[5].mxu1 }
 0x1e4   : > { %993 = vtanh.f32 %v554_v43 }
 0x1e5   : > { %v558_v46 = vpop.f32.mrb[6].mxu1 }
 0x1e6   : > { %v559_v47 = vadd.f32 %v558_v46, %v467_v45  ;;  %v904_v48 = vpop.f32.mrb[7].mxu1 }
 0x1e8   : > { %995 = vtanh.f32 %v559_v47 }
 0x1ea   : > { %v992_v49 = vpop.eup %991 }
 0x1ee   : > { %v994_v50 = vpop.eup %993 }
 0x1ef   : > { %v933_v51 = vpack.c.bf16 %v994_v50, %v992_v49 }
 0x1f1   : > { %934 = vmatpush3.bf16.msra.mxu0 %v933_v51 }
 0x1f2   : > { %909 = vmatprep.subr.mxu0 %v1067_v1  ;;  %v996_v53 = vpop.eup %995 }
 0x1f5   : > { %910 = vmatpush3.msk.msra.mxu0 %vm361_vm1, %v996_v53 }
 0x1f6   : > { %912 = vmatmul.mubr.msk.f32.vlgmr.msra.gmra.mrb[4].mxu0 %vm469_vm3, %v565_v52 }
 0x1f7   : > { %914 = vmatprep.mubr.msk.f32.mxu0 %vm1068_vm0, %v1067_v1 }
 0x1fa   : > { %915 = vmatmul.mubr.msk.f32.gmra.mrb[6].mxu0 %vm469_vm3, %v566_v54 }
 0x1fb   : > { %917 = vmatprep.mubr.msk.f32.mxu0 %vm1068_vm0, %v1067_v1 }
 0x1fe   : > { %918 = vmatmul.mubr.msk.f32.gmra.mrb[8].mxu0 %vm469_vm3, %v567_v55 }
 0x2c9   : > { %v664_v56 = vpop.f32.mrb[4].mxu0 }
 0x2ca   : > { %v913_v58 = vpop.f32.mrb[5].mxu0  ;;  %v665_v59 = vadd.f32 %v664_v56, %v574_v57 }
 0x2cc   : > { %997 = vtanh.f32 %v665_v59 }
 0x2cd   : > { %v669_v61 = vpop.f32.mrb[6].mxu0 }
 0x2ce   : > { %v670_v62 = vadd.f32 %v669_v61, %v579_v60  ;;  %v916_v63 = vpop.f32.mrb[7].mxu0 }
 0x2d0   : > { %999 = vtanh.f32 %v670_v62 }
 0x2d1   : > { %v674_v2 = vpop.f32.mrb[8].mxu0 }
 0x2d2   : > { %v675_v3 = vadd.f32 %v674_v2, %v584_v0  ;;  %v919_v4 = vpop.f32.mrb[9].mxu0 }
 0x2d4   : > { %1001 = vtanh.f32 %v675_v3 }
 0x2d6   : > { %v998_v5 = vpop.eup %997 }
 0x2da   : > { %v1000_v6 = vpop.eup %999 }
 0x2db   : > { %v936_v7 = vpack.c.bf16 %v1000_v6, %v998_v5 }
 0x2dd   : > { %937 = vmatpush3.bf16.msra.mxu1 %v936_v7 }
 0x2de   : > { %924 = vmatprep.subr.mxu1 %v1067_v1  ;;  %v1002_v9 = vpop.eup %1001 }
 0x2e1   : > { %925 = vmatpush3.msk.msra.mxu1 %vm361_vm1, %v1002_v9 }
 0x2e2   : > { %927 = vmatmul.mubr.msk.f32.vlgmr.msra.gmra.mrb[8].mxu1 %vm469_vm3, %v681_v8 }
 0x3b5   : > { %v764_v1 = vpop.f32.mrb[8].mxu1 }
 0x3b6   : > { %v765_v15 = vadd.f32 %v764_v1, %v691_v14  ;;  %v928_v16 = vpop.f32.mrb[9].mxu1 }
 0x3b8   : > { %768 = vst [vmem:[%s324_s28] sm:$0x1] %v765_v15 }
 0x3b9   : > { %1016 = shalt.err (!%p1013_p3)
}
 0x3ba   : > { %s1017_s24 = scalar_lea.hbm %s1280_s15, 16  ;;  %s1021_s27 = scalar_lea.hbm %s1331_s9, 32 }
 0x3bb   : > { %p1018_p4 = scmp.ne.s32.totalorder %s1280_s15, %s1017_s24  ;;  %p1022_p9 = scmp.lt.u32.totalorder %s1280_s15, %s1331_s9 }
 0x3bc   : > { %p1023_p10 = scmp.lt.u32.totalorder %s1021_s27, %s1017_s24  ;;  %p1025_p12 = scmp.lt.u32.totalorder %s1017_s24, %s1280_s15 }
 0x3bd   : > { %p1019_p7 = pnand %p1018_p4, %p1163_p5 }
 0x3be   : > { %p1024_p11 = por %p1023_p10, %p1022_p9 }
 0x3bf   : > { %p1020_p8 = pneg %p1019_p7 }
 0x3c0   : > { %p1026_p13 = por %p1025_p12, %p1024_p11 }
 0x3c2   : > { %p1027_p0 = pnand %p1026_p13, %p1020_p8 }
 0x3c4   : > { %1030 = shalt.err (!%p1027_p0)
}
 0x3c5   : > { %940 = dma.vmem_to_hbm [thread:$0]  (%p1163_p5), %s1282_s29, 16, %s1280_s15, %s770_s17  }
 0x3c6 PF: > { %p946_p1 = scmp.ge.s32.totalorder %s1065_s14, 2  ;;  %s794_s10 = sand.u32 1, %s1053_s11  }
 0x3c7   : > { %s795_s18 = scalar_lea.sflag [#allocation4], %s794_s10 }
 0x3c8   : > { %p943_p2 = pnand %p946_p1, %p1167_p6 }
 0x3ca   : > { %1048 = dma.done.wait (!%p943_p2), %s795_s18, 16  }
 0x3cb   : > { %1050 = vsyncadd (!%p943_p2), %s795_s18, 4294967280  ;;  %p21_p3 = scmp.ge.s32.totalorder %s1150_s16, 4   ;;  %s1334_s11 = smov %s1057_s12 }
 0x3cc   : > { %s1335_s12 = smov %s1061_s13  ;;  %s1336_s13 = smov %s1161_s19 }
 0x3cd   : > { %s1337_s14 = smov %s1150_s16  ;;  %23 = sbr.rel (!%p21_p3) target bundleno = 6 (0x6), region = 91 }
 0x3d4   :  { %799 = vsyncpa [#allocation4], 1 }
 0x3d5   :  { %801 = vsyncpa [#allocation4 + $0x1], 1 }

</bundles_post_ra>
